<compile_context>
chip_gen: v5e
topology: v5e:2x2
jax: 0.10.0
libtpu: 0.0.40
codegen_flags: <defaults>
</compile_context>

<pallas_src>
import functools

import jax
import jax.numpy as jnp
from jax.experimental import pallas as pl
from jax.experimental.pallas import tpu as pltpu


def _ls_ce_kernel(x_ref, xt_ref, out_ref, *, confidence, smoothing, n_rows, tb):
    i = pl.program_id(0)

    x = x_ref[...]                                          # (TB, C) native dtype
    tb_, c = x.shape

    # Row statistics on the raw tile (f32 accumulation for the sum).
    m = jnp.max(x, axis=-1, keepdims=True).astype(jnp.float32)              # (TB, 1)
    sx = jnp.sum(x, axis=-1, keepdims=True, dtype=jnp.float32)              # (TB, 1)

    # Only the exp path needs the shifted f32 tile.
    shifted = x.astype(jnp.float32) - m                                      # (TB, C)
    lse = jnp.log(jnp.sum(jnp.exp(shifted), axis=-1, keepdims=True))         # (TB, 1)

    x_t = xt_ref[...]                                                        # (TB, 1) f32
    weighted = (smoothing / float(c)) * (sx - float(c) * m) + confidence * (x_t - m)
    loss_rows = lse - weighted                                               # (TB, 1)

    # Mask rows beyond the true batch (partial last block reads garbage there).
    row = jax.lax.broadcasted_iota(jnp.int32, (tb_, 1), 0)
    valid = (i * tb + row) < n_rows
    loss_rows = jnp.where(valid, loss_rows, 0.0)

    # Per-tile partial sum; final reduce + divide-by-N happens once in JAX.
    out_ref[...] = jnp.sum(loss_rows).reshape(1, 1)


def _vmem_budget_bytes(tb, c, itemsize):
    tile = tb * c * itemsize            # one native-dtype x tile
    temps = 3 * tb * c * 4              # shifted + exp + slack (f32)
    small = 4 * tb * 4                  # x_t buffers + per-row stats
    return 2 * tile + temps + small + (2 << 20)


def label_smoothing_cross_entropy(x, target, smoothing=0.1, block_rows=None):
    """x: [N, C] float logits, target: [N] int class ids. Returns scalar mean loss."""
    assert smoothing < 1.0
    n, c = x.shape
    confidence = 1.0 - smoothing
    itemsize = jnp.dtype(x.dtype).itemsize

    # Sublane packing of the input dtype: f32 -> 8 rows, bf16 -> 16, int8/fp8 -> 32.
    row_align = max(8, 32 // max(1, itemsize))

    # Device-aware tile target: big tiles on 128 MiB VMEM parts, smaller on v7x (64 MiB).
    try:
        vmem_cap = int(pltpu.get_tpu_info().vmem_capacity_bytes)
    except Exception:
        vmem_cap = 64 * 1024 * 1024  # assume the tightest (v7x per-TC) budget
    if vmem_cap > 96 * 1024 * 1024:
        target_tile_bytes = 6 * 1024 * 1024   # v5e / v6e
        tb_cap = 4096
        vmem_cap_limit = 100 * 1024 * 1024
    else:
        target_tile_bytes = 3 * 1024 * 1024   # v7x
        tb_cap = 2048
        vmem_cap_limit = 48 * 1024 * 1024

    if block_rows is None:
        tb = target_tile_bytes // max(1, c * itemsize)
        tb = int(max(row_align, min(tb_cap, (tb // row_align) * row_align)))
    else:
        tb = int(max(row_align, (block_rows // row_align) * row_align))
    # Never use a block taller than the (aligned-up) batch.
    tb = min(tb, ((n + row_align - 1) // row_align) * row_align)

    # Shrink TB if the explicit VMEM budget would blow the per-chip cap.
    while _vmem_budget_bytes(tb, c, itemsize) > vmem_cap_limit and tb > row_align:
        tb = max(row_align, ((tb // 2) // row_align) * row_align)

    num_tiles = pl.cdiv(n, tb)

    # Gather the target logit once in the wrapper (N scalars of HBM traffic);
    # targets never enter the kernel.
    x_t = jnp.take_along_axis(
        x, target.astype(jnp.int32)[:, None], axis=-1
    ).astype(jnp.float32)                                   # (N, 1)

    kernel = functools.partial(
        _ls_ce_kernel,
        confidence=float(confidence),
        smoothing=float(smoothing),
        n_rows=n,
        tb=tb,
    )

    cost = pl.CostEstimate(
        flops=int(5 * n * c),
        transcendentals=int(n * c),
        bytes_accessed=int(n * c * itemsize + n * 4 + num_tiles * 4),
    )

    vmem_limit = int(
        min(vmem_cap_limit, max(32 * 1024 * 1024, _vmem_budget_bytes(tb, c, itemsize)))
    )

    partials = pl.pallas_call(
        kernel,
        out_shape=jax.ShapeDtypeStruct((num_tiles, 1), jnp.float32),
        grid_spec=pltpu.PrefetchScalarGridSpec(
            num_scalar_prefetch=0,
            grid=(num_tiles,),
            in_specs=[
                pl.BlockSpec((tb, c), lambda i: (i, 0)),     # logits tile, native dtype
                pl.BlockSpec((tb, 1), lambda i: (i, 0)),     # gathered target logit
            ],
            out_specs=pl.BlockSpec((1, 1), lambda i: (i, 0)),
        ),
        compiler_params=pltpu.CompilerParams(
            dimension_semantics=("parallel",),   # independent tiles -> megacore on v7x
            vmem_limit_bytes=vmem_limit,
        ),
        cost_estimate=cost,
    )(x, x_t)

    return jnp.sum(partials) / n


def _reference(x, target, smoothing):
    logp = jax.nn.log_softmax(x.astype(jnp.float32), axis=-1)
    nll = -jnp.take_along_axis(logp, target[:, None], axis=-1)[:, 0]
    smooth = -jnp.mean(logp, axis=-1)
    return jnp.mean((1.0 - smoothing) * nll + smoothing * smooth)


if __name__ == "__main__":
    key = jax.random.PRNGKey(0)

    # Small shape matching the module's forward: x [N, C], target [N].
    kx, kt = jax.random.split(key)
    N, C = 8, 32
    x = jax.random.normal(kx, (N, C), dtype=jnp.float32)
    target = jax.random.randint(kt, (N,), 0, C, dtype=jnp.int32)

    loss = label_smoothing_cross_entropy(x, target, smoothing=0.1)
    jax.block_until_ready(loss)
    ref = _reference(x, target, 0.1)
    assert jnp.allclose(loss, ref, atol=1e-5, rtol=1e-5), (loss, ref)

    # Second check: multi-tile grid + partial last block (no wrapper-side padding).
    kx2, kt2 = jax.random.split(jax.random.PRNGKey(1))
    N2, C2 = 100, 256
    x2 = jax.random.normal(kx2, (N2, C2), dtype=jnp.float32)
    target2 = jax.random.randint(kt2, (N2,), 0, C2, dtype=jnp.int32)

    loss2 = label_smoothing_cross_entropy(x2, target2, smoothing=0.1, block_rows=32)
    jax.block_until_ready(loss2)
    ref2 = _reference(x2, target2, 0.1)
    assert jnp.allclose(loss2, ref2, atol=1e-5, rtol=1e-5), (loss2, ref2)

    print("KERNEL_OK")
</pallas_src>

<mosaic_0001>
module attributes {stable_mosaic.version = 11 : i64} {
  func.func @_ls_ce_kernel(%arg0: i32, %arg1: memref<8x32xf32, #tpu.memory_space<vmem>>, %arg2: memref<8x1xf32, #tpu.memory_space<vmem>>, %arg3: memref<1x1xf32, #tpu.memory_space<vmem>>) attributes {dimension_semantics = [#tpu.dimension_semantics<parallel>], iteration_bounds = array<i64: 1>, scalar_prefetch = 0 : i64, scratch_operands = 0 : i64, tpu.core_type = #tpu.core_type<tc>, window_params = [{transform_indices = @transform_0, window_bounds = array<i64: 8, 32>}, {transform_indices = @transform_1, window_bounds = array<i64: 8, 1>}, {transform_indices = @transform_2, window_bounds = array<i64: 1, 1>}]} {
    %c0 = arith.constant 0 : index
    %c0_0 = arith.constant 0 : index
    %0 = vector.load %arg1[%c0, %c0_0] : memref<8x32xf32, #tpu.memory_space<vmem>>, vector<8x32xf32>
    %cst = arith.constant dense<0xFF800000> : vector<8xf32>
    %1 = vector.multi_reduction <maximumf>, %0, %cst [1] : vector<8x32xf32> to vector<8xf32>
    %2 = vector.shape_cast %1 : vector<8xf32> to vector<8x1xf32>
    %cst_1 = arith.constant dense<0.000000e+00> : vector<8xf32>
    %3 = vector.multi_reduction <add>, %0, %cst_1 [1] : vector<8x32xf32> to vector<8xf32>
    %4 = vector.shape_cast %3 : vector<8xf32> to vector<8x1xf32>
    %5 = vector.broadcast %2 : vector<8x1xf32> to vector<8x32xf32>
    %6 = arith.subf %0, %5 : vector<8x32xf32>
    %7 = math.exp %6 : vector<8x32xf32>
    %cst_2 = arith.constant dense<0.000000e+00> : vector<8xf32>
    %8 = vector.multi_reduction <add>, %7, %cst_2 [1] : vector<8x32xf32> to vector<8xf32>
    %9 = vector.shape_cast %8 : vector<8xf32> to vector<8x1xf32>
    %10 = math.log %9 : vector<8x1xf32>
    %c0_3 = arith.constant 0 : index
    %c0_4 = arith.constant 0 : index
    %11 = vector.load %arg2[%c0_3, %c0_4] : memref<8x1xf32, #tpu.memory_space<vmem>>, vector<8x1xf32>
    %cst_5 = arith.constant 3.200000e+01 : f32
    %12 = vector.broadcast %cst_5 : f32 to vector<8x1xf32>
    %13 = arith.mulf %12, %2 : vector<8x1xf32>
    %14 = arith.subf %4, %13 : vector<8x1xf32>
    %cst_6 = arith.constant 3.125000e-03 : f32
    %15 = vector.broadcast %cst_6 : f32 to vector<8x1xf32>
    %16 = arith.mulf %15, %14 : vector<8x1xf32>
    %17 = arith.subf %11, %2 : vector<8x1xf32>
    %cst_7 = arith.constant 0.899999976 : f32
    %18 = vector.broadcast %cst_7 : f32 to vector<8x1xf32>
    %19 = arith.mulf %18, %17 : vector<8x1xf32>
    %20 = arith.addf %16, %19 : vector<8x1xf32>
    %21 = arith.subf %10, %20 : vector<8x1xf32>
    %22 = tpu.iota {dimensions = array<i32: 0>} : vector<8x1xi32>
    %c8_i32 = arith.constant 8 : i32
    %23 = arith.muli %arg0, %c8_i32 : i32
    %24 = vector.broadcast %23 : i32 to vector<8x1xi32>
    %25 = arith.addi %24, %22 : vector<8x1xi32>
    %c8_i32_8 = arith.constant 8 : i32
    %26 = vector.broadcast %c8_i32_8 : i32 to vector<8x1xi32>
    %27 = arith.cmpi slt, %25, %26 : vector<8x1xi32>
    %cst_9 = arith.constant 0.000000e+00 : f32
    %28 = vector.broadcast %cst_9 : f32 to vector<8x1xf32>
    %29 = arith.select %27, %21, %28 : vector<8x1xi1>, vector<8x1xf32>
    %30 = vector.shape_cast %29 : vector<8x1xf32> to vector<1x8x1xf32>
    %cst_10 = arith.constant dense<0.000000e+00> : vector<1xf32>
    %31 = vector.multi_reduction <add>, %30, %cst_10 [1, 2] : vector<1x8x1xf32> to vector<1xf32>
    %32 = vector.shape_cast %31 : vector<1xf32> to vector<1x1x1xf32>
    %33 = vector.extract %32[0, 0, 0] : f32 from vector<1x1x1xf32>
    %34 = vector.broadcast %33 : f32 to vector<1x1xf32>
    %c0_11 = arith.constant 0 : index
    %c0_12 = arith.constant 0 : index
    %35 = vector.load %arg3[%c0_11, %c0_12] : memref<1x1xf32, #tpu.memory_space<vmem>>, vector<1x1xf32>
    tpu.vector_store %arg3[%c0_11, %c0_12], %34 {strides = array<i32>} : memref<1x1xf32, #tpu.memory_space<vmem>>, vector<1x1xf32>,
    return
  }
  func.func @transform_0(%arg0: i32) -> (i32, i32) {
    %c0_i32 = arith.constant 0 : i32
    %c0_i32_0 = arith.constant 0 : i32
    return %arg0, %c0_i32 : i32, i32
  }
  func.func @transform_1(%arg0: i32) -> (i32, i32) {
    %c0_i32 = arith.constant 0 : i32
    %c0_i32_0 = arith.constant 0 : i32
    return %arg0, %c0_i32 : i32, i32
  }
  func.func @transform_2(%arg0: i32) -> (i32, i32) {
    %c0_i32 = arith.constant 0 : i32
    %c0_i32_0 = arith.constant 0 : i32
    return %arg0, %c0_i32 : i32, i32
  }
}

</mosaic_0001>

<bundles_post_ra>
// kernel: tpu_custom_call.1
= control target key start
LH: loop header
LB: loop body
LE: loop exit
PB: predicated region body
PF: predicated region fallthrough
CT: control target
= control target key end

     0   :  { %vm13_vm0 = vcmask 261120   ;;  %s131_s0 = inlined_call_operand.vmem [shape: f32[8,32], index: 0, kind: input, shape index: {}]   ;;  %s132_s1 = inlined_call_operand.vmem [shape: f32[8,1], index: 1, kind: input, shape index: {}]   ;;  %s133_s2 = inlined_call_operand.hbm [shape: f32[1,1], index: 2, kind: output, shape index: {}]  }
   0x1   :  { %v12_v0 = vld [vmem:[%s131_s0] sm:$0xff] }
   0x2   :  { %7 = vsyncpa [#allocation3], 0  ;;  %v14_v1 = vsel %vm13_vm0, %v12_v0, -inf  ;;  %v17_v2 = vsel %vm13_vm0, %v12_v0, 0.0  ;;  %v28_v10 = vld [vmem:[%s132_s1] sm:$0xff]  ;;  %vm43_vm1 = vcmask 7168  }
   0x3   :  { %15 = vmax.xlane.f32.xlu0 %v14_v1  ;;  %18 = vadd.xlane.f32.xlu1 %v17_v2  ;;  %s106_s0 = smov [#allocation2]   ;;  %s64_s15 = sshll.u32 %s133_s2, 4  ;;  %vm55_vm2 = vcmask 0   ;;  %s65_s15 = int_to_ptr.hbm [resolvable:$true] %s64_s15 }
   0x4   :  { %s62_s1 = sshll.u32 %s106_s0, 4  ;;  %s63_s1 = int_to_ptr.vmem [resolvable:$true] %s62_s1 }
  0x76   :  { %v16_v3 = vpop.xlane.xlu0 %15  ;;  %v19_v9 = vpop.xlane.xlu1 %18 }
  0x77   :  { %v20_v4 = vsub.f32 %v12_v0, %v16_v3  ;;  %v29_v8 = vmul.f32 32.0, %v16_v3  ;;  %v32_v13 = vsub.f32 %v28_v10, %v16_v3 }
  0x79   :  { %v21_v5 = vmul.f32 1.442695, %v20_v4  ;;  %v30_v11 = vsub.f32 %v19_v9, %v29_v8  ;;  %v33_v15 = vmul.f32 0.9, %v32_v13 }
  0x7b   :  { %76 = vpow2.f32 %v21_v5  ;;  %v31_v14 = vmul.f32 0.003125, %v30_v11 }
  0x7d   :  { %v34_v17 = vadd.f32 %v33_v15, %v31_v14 }
  0x81   :  { %v77_v6 = vpop.eup %76 }
  0x82   :  { %v23_v7 = vsel %vm13_vm0, %v77_v6, 0.0 }
  0x83   :  { %24 = vadd.xlane.f32.xlu0 %v23_v7 }
  0xf6   :  { %v25_v12 = vpop.xlane.xlu0 %24 }
  0xf7   :  { %78 = vlog2.f32 %v25_v12 }
  0xfd   :  { %v79_v16 = vpop.eup %78 }
  0xfe   :  { %v27_v18 = vmul.f32 0.6931472, %v79_v16 }
 0x100   :  { %v35_v19 = vsub.f32 %v27_v18, %v34_v17 }
 0x102   :  { %v44_v20 = vsel %vm43_vm1, %v35_v19, 0.0 }
 0x103   :  { %45 = vadd.xlane.f32.xlu1 %v44_v20 }
 0x176   :  { %v46_v21 = vpop.xlane.xlu1 %45 }
 0x177   :  { %v47_v22 = vrot.slane %v46_v21, 4 }
 0x179   :  { %v48_v23 = vadd.f32 %v47_v22, %v46_v21 }
 0x17b   :  { %v49_v24 = vrot.slane %v48_v23, 2 }
 0x17d   :  { %v50_v25 = vadd.f32 %v49_v24, %v48_v23 }
 0x17f   :  { %v51_v26 = vrot.slane %v50_v25, 1 }
 0x181   :  { %v52_v27 = vadd.f32 %v51_v26, %v50_v25 }
 0x183   :  { %73 = vpush %v52_v27 }
 0x1b4   :  { %s74_s16 = spop %73 }
 0x1b5   :  { %v54_v28 = vstv %s74_s16 }
 0x1b6   :  { %56 = vst.msk [vmem:[#allocation2] sm:$0x1] %vm55_vm2, %v54_v28 }
 0x1b7   :  { %67 = dma.vmem_to_hbm [thread:$0]  %s63_s1, 16, %s65_s15, [#allocation3]  }
 0x1b8   :  { %104 = dma.done.wait [#allocation3], 16  }
 0x1b9   :  { %105 = vsyncadd [#allocation3], 4294967280 }
 0x1ba   :  { %72 = vsyncpa [#allocation3], 1 }

</bundles_post_ra>
